<compile_context>
chip_gen: v7x
topology: tpu7x:2x2x1
jax: 0.10.0
libtpu: 0.0.40
codegen_flags: <defaults>
</compile_context>

<pallas_src>
import math

import jax
import jax.numpy as jnp
from jax import lax
from jax.experimental import pallas as pl
from jax.experimental.pallas import tpu as pltpu

_LANE = 128
_PAD_LOGIT = -1e4   # sigmoid(-1e4) == 0 and bce(-1e4, 0) == 0 -> pads contribute exactly 0.


def _cdiv(a, b):
    return -(-a // b)


def threeway_loss(logits, labels, *, tile_sub_max=2048, soft_labels=False,
                  approx_reciprocal=True):
    """Fused FocalLoss(alpha=1, gamma=2) + BCEWithLogits + SoftDice loss.

    logits, labels: (N, ...) float arrays (bf16 welcome: streams at 2 B/elem).
    soft_labels: set True if labels are not strictly {0,1} (uses the exact
        pt = exp(-bce), one extra EUP exp per element).
    approx_reciprocal: EUP approximate reciprocal for the sigmoid (~2^-12
        relative error); set False for exact IEEE division.
    """
    n = logits.shape[0]
    d = math.prod(logits.shape[1:])

    logits2d = logits.reshape(n, -1)
    labels2d = labels.reshape(n, -1)

    # ---- layout: (N, D) -> (N, S, 128), sublane axis carries D -------------
    # Pad only up to the next lane multiple (and at least one full 8x128 vreg).
    # Segmentation-sized D is normally already a multiple of 128 -> free
    # reshape, no HBM copy.
    d_pad = max(_cdiv(d, _LANE) * _LANE, 8 * _LANE)
    if d_pad != d:
        # TODO(synk): an Element-indexed flat layout could avoid this copy for
        # D % 128 != 0; the padded tail contributes exactly zero to every sum.
        logits2d = jnp.pad(logits2d, ((0, 0), (0, d_pad - d)),
                           constant_values=_PAD_LOGIT)
        labels2d = jnp.pad(labels2d, ((0, 0), (0, d_pad - d)),
                           constant_values=0)
    s = d_pad // _LANE
    x3 = logits2d.reshape(n, s, _LANE)
    t3 = labels2d.reshape(n, s, _LANE)

    # ---- tile sizing: ~1 MiB (f32) per input block, sublane-aligned --------
    tile_sub = min(max(8, (tile_sub_max // 8) * 8), (s // 8) * 8)
    nk = _cdiv(s, tile_sub)
    ragged = (s % tile_sub) != 0
    grid = (n, nk)                      # reduction axis last; row axis parallel

    def kernel(x_ref, t_ref, loss_ref, inter_ref, den_ref):
        k = pl.program_id(1)

        @pl.when(k == 0)
        def _init():
            loss_ref[...] = jnp.zeros_like(loss_ref)
            inter_ref[...] = jnp.zeros_like(inter_ref)
            den_ref[...] = jnp.zeros_like(den_ref)

        x = x_ref[0].astype(jnp.float32)          # (tile_sub, 128)
        t = t_ref[0].astype(jnp.float32)

        # Numerically stable BCE-with-logits + sigmoid sharing e = exp(-|x|).
        e = jnp.exp(-jnp.abs(x))
        bce = jnp.maximum(x, 0.0) - x * t + jnp.log1p(e)
        if approx_reciprocal:
            inv_1pe = pl.reciprocal(1.0 + e, approx=True)
        else:
            inv_1pe = 1.0 / (1.0 + e)
        probs = jnp.where(x >= 0.0, inv_1pe, e * inv_1pe)      # sigmoid(x)
        if soft_labels:
            pt = jnp.exp(-bce)                                  # exact for soft labels
        else:
            pt = probs * t + (1.0 - probs) * (1.0 - t)          # exact for {0,1} labels
        omp = 1.0 - pt
        loss_elem = bce + omp * omp * bce          # bce + focal, one accumulator
        inter_elem = probs * t
        den_elem = probs + t                       # merged dice denominator

        if ragged:
            # Last D tile overhangs S; zero the out-of-range sublanes (the
            # overhang data is unspecified, the select discards it safely).
            sub = k * tile_sub + lax.broadcasted_iota(
                jnp.int32, (tile_sub, _LANE), 0)
            valid = sub < s
            loss_elem = jnp.where(valid, loss_elem, 0.0)
            inter_elem = jnp.where(valid, inter_elem, 0.0)
            den_elem = jnp.where(valid, den_elem, 0.0)

        # Lane-dense accumulation: fold sublane groups with pure VPU adds into
        # the resident (8, 128) output slabs; no per-step cross-lane reduce.
        def accum(acc_ref, vals):
            acc_ref[0] += jnp.sum(vals.reshape(tile_sub // 8, 8, _LANE), axis=0)

        accum(loss_ref, loss_elem)
        accum(inter_ref, inter_elem)
        accum(den_ref, den_elem)

    acc_shape = jax.ShapeDtypeStruct((n, 8, _LANE), jnp.float32)
    acc_spec = pl.BlockSpec((1, 8, _LANE), lambda i, k: (i, 0, 0))
    in_spec = pl.BlockSpec((1, tile_sub, _LANE), lambda i, k: (i, k, 0))

    in_bytes = x3.size * x3.dtype.itemsize + t3.size * t3.dtype.itemsize
    cost = pl.CostEstimate(flops=22 * n * d_pad,
                           transcendentals=3 * n * d_pad,
                           bytes_accessed=in_bytes + 3 * n * 8 * _LANE * 4)

    loss_acc, inter_acc, den_acc = pl.pallas_call(
        kernel,
        out_shape=(acc_shape, acc_shape, acc_shape),
        grid=grid,
        in_specs=[in_spec, in_spec],
        out_specs=(acc_spec, acc_spec, acc_spec),
        compiler_params=pltpu.CompilerParams(
            # Row axis has no cross-tile state -> shards across v7x's 2 TCs.
            dimension_semantics=("parallel", "arbitrary"),
        ),
        cost_estimate=cost,
    )(x3, t3)

    # Tiny epilogue on (N, 8, 128) partials in plain JAX (scaling hoisted here).
    bce_focal_sum = jnp.sum(loss_acc)
    inter = jnp.sum(inter_acc, axis=(1, 2))       # (N,)
    den = jnp.sum(den_acc, axis=(1, 2))           # (N,)
    score = (2.0 * inter + 1.0) / (den + 1.0)
    return bce_focal_sum / float(n * d) + (1.0 - jnp.sum(score) / float(n))


def _threeway_loss_ref(logits, labels):
    """Pure-JAX reference mirroring the PyTorch ThreeWayLoss module."""
    n = logits.shape[0]
    x = logits.reshape(n, -1).astype(jnp.float32)
    t = labels.reshape(n, -1).astype(jnp.float32)
    bce = jnp.maximum(x, 0.0) - x * t + jnp.log1p(jnp.exp(-jnp.abs(x)))
    pt = jnp.exp(-bce)
    focal_loss = jnp.mean((1.0 - pt) ** 2 * bce)
    bce_loss = jnp.mean(bce)
    probs = jax.nn.sigmoid(x)
    inter = jnp.sum(probs * t, axis=1)
    score = (2.0 * inter + 1.0) / (jnp.sum(probs, axis=1) + jnp.sum(t, axis=1) + 1.0)
    dice_loss = 1.0 - jnp.sum(score) / n
    return focal_loss + bce_loss + dice_loss


if __name__ == "__main__":
    key = jax.random.PRNGKey(0)
    k1, k2, k3, k4, k5, k6 = jax.random.split(key, 6)

    # Case 1: D = 4*16*16 = 1024 (lane-aligned, no pad), hard labels, nk=1.
    logits = jax.random.normal(k1, (2, 4, 16, 16), dtype=jnp.float32)
    labels = (jax.random.uniform(k2, (2, 4, 16, 16)) > 0.5).astype(jnp.float32)
    loss = threeway_loss(logits, labels)
    jax.block_until_ready(loss)
    ref = _threeway_loss_ref(logits, labels)
    assert jnp.allclose(loss, ref, rtol=5e-3, atol=5e-3), (loss, ref)

    # Case 2: D = 4*17*17 = 1156 -> lane pad + ragged last D tile + N=10 rows.
    logits2 = jax.random.normal(k3, (10, 4, 17, 17), dtype=jnp.float32)
    labels2 = (jax.random.uniform(k4, (10, 4, 17, 17)) > 0.5).astype(jnp.float32)
    loss2 = threeway_loss(logits2, labels2)
    jax.block_until_ready(loss2)
    ref2 = _threeway_loss_ref(logits2, labels2)
    assert jnp.allclose(loss2, ref2, rtol=5e-3, atol=5e-3), (loss2, ref2)

    # Case 3: bf16 inputs (stream at 2 B/elem), multiple D tiles (tile_sub=8).
    logits3 = jax.random.normal(k5, (2, 4, 32, 32), dtype=jnp.bfloat16)
    labels3 = (jax.random.uniform(k6, (2, 4, 32, 32)) > 0.5).astype(jnp.bfloat16)
    loss3 = threeway_loss(logits3, labels3, tile_sub_max=8)
    jax.block_until_ready(loss3)
    ref3 = _threeway_loss_ref(logits3, labels3)
    assert jnp.allclose(loss3, ref3, rtol=5e-3, atol=5e-3), (loss3, ref3)

    # Case 4: soft labels (exact exp(-bce) path) with exact reciprocal.
    labels4 = jax.random.uniform(k2, (2, 4, 16, 16), dtype=jnp.float32)
    loss4 = threeway_loss(logits, labels4, soft_labels=True,
                          approx_reciprocal=False)
    jax.block_until_ready(loss4)
    ref4 = _threeway_loss_ref(logits, labels4)
    assert jnp.allclose(loss4, ref4, rtol=1e-3, atol=1e-3), (loss4, ref4)

    print("KERNEL_OK")
</pallas_src>

<mosaic_0001>
module attributes {stable_mosaic.version = 11 : i64} {
  func.func @kernel(%arg0: i32, %arg1: i32, %arg2: memref<1x8x128xf32, #tpu.memory_space<vmem>>, %arg3: memref<1x8x128xf32, #tpu.memory_space<vmem>>, %arg4: memref<1x8x128xf32, #tpu.memory_space<vmem>>, %arg5: memref<1x8x128xf32, #tpu.memory_space<vmem>>, %arg6: memref<1x8x128xf32, #tpu.memory_space<vmem>>) attributes {dimension_semantics = [#tpu.dimension_semantics<parallel>, #tpu.dimension_semantics<arbitrary>], iteration_bounds = array<i64: 2, 1>, scalar_prefetch = 0 : i64, scratch_operands = 0 : i64, tpu.core_type = #tpu.core_type<tc>, window_params = [{transform_indices = @transform_0, window_bounds = array<i64: 1, 8, 128>}, {transform_indices = @transform_1, window_bounds = array<i64: 1, 8, 128>}, {transform_indices = @transform_2, window_bounds = array<i64: 1, 8, 128>}, {transform_indices = @transform_3, window_bounds = array<i64: 1, 8, 128>}, {transform_indices = @transform_4, window_bounds = array<i64: 1, 8, 128>}]} {
    %c0_i32 = arith.constant 0 : i32
    %0 = arith.cmpi eq, %arg1, %c0_i32 : i32
    %1 = arith.extui %0 : i1 to i32
    %c0_i32_0 = arith.constant 0 : i32
    %2 = arith.cmpi ne, %1, %c0_i32_0 : i32
    scf.if %2 {
      %cst_33 = arith.constant 0.000000e+00 : f32
      %62 = vector.broadcast %cst_33 : f32 to vector<1x8x128xf32>
      %c0_34 = arith.constant 0 : index
      %c0_35 = arith.constant 0 : index
      %c0_36 = arith.constant 0 : index
      %63 = vector.load %arg4[%c0_34, %c0_35, %c0_36] : memref<1x8x128xf32, #tpu.memory_space<vmem>>, vector<1x8x128xf32>
      tpu.vector_store %arg4[%c0_34, %c0_35, %c0_36], %62 {strides = array<i32>} : memref<1x8x128xf32, #tpu.memory_space<vmem>>, vector<1x8x128xf32>,
      %cst_37 = arith.constant 0.000000e+00 : f32
      %64 = vector.broadcast %cst_37 : f32 to vector<1x8x128xf32>
      %c0_38 = arith.constant 0 : index
      %c0_39 = arith.constant 0 : index
      %c0_40 = arith.constant 0 : index
      %65 = vector.load %arg5[%c0_38, %c0_39, %c0_40] : memref<1x8x128xf32, #tpu.memory_space<vmem>>, vector<1x8x128xf32>
      tpu.vector_store %arg5[%c0_38, %c0_39, %c0_40], %64 {strides = array<i32>} : memref<1x8x128xf32, #tpu.memory_space<vmem>>, vector<1x8x128xf32>,
      %cst_41 = arith.constant 0.000000e+00 : f32
      %66 = vector.broadcast %cst_41 : f32 to vector<1x8x128xf32>
      %c0_42 = arith.constant 0 : index
      %c0_43 = arith.constant 0 : index
      %c0_44 = arith.constant 0 : index
      %67 = vector.load %arg6[%c0_42, %c0_43, %c0_44] : memref<1x8x128xf32, #tpu.memory_space<vmem>>, vector<1x8x128xf32>
      tpu.vector_store %arg6[%c0_42, %c0_43, %c0_44], %66 {strides = array<i32>} : memref<1x8x128xf32, #tpu.memory_space<vmem>>, vector<1x8x128xf32>,
    } else {
    }
    %c0 = arith.constant 0 : index
    %c0_1 = arith.constant 0 : index
    %c0_2 = arith.constant 0 : index
    %3 = vector.load %arg2[%c0, %c0_1, %c0_2] : memref<1x8x128xf32, #tpu.memory_space<vmem>>, vector<1x8x128xf32>
    %4 = vector.shape_cast %3 : vector<1x8x128xf32> to vector<8x128xf32>
    %c0_3 = arith.constant 0 : index
    %c0_4 = arith.constant 0 : index
    %c0_5 = arith.constant 0 : index
    %5 = vector.load %arg3[%c0_3, %c0_4, %c0_5] : memref<1x8x128xf32, #tpu.memory_space<vmem>>, vector<1x8x128xf32>
    %6 = vector.shape_cast %5 : vector<1x8x128xf32> to vector<8x128xf32>
    %7 = math.absf %4 : vector<8x128xf32>
    %cst = arith.constant 0.000000e+00 : f32
    %8 = vector.broadcast %cst : f32 to vector<8x128xf32>
    %9 = arith.subf %8, %7 : vector<8x128xf32>
    %10 = math.exp %9 : vector<8x128xf32>
    %cst_6 = arith.constant 0.000000e+00 : f32
    %11 = vector.broadcast %cst_6 : f32 to vector<8x128xf32>
    %12 = arith.maximumf %4, %11 : vector<8x128xf32>
    %13 = arith.mulf %4, %6 : vector<8x128xf32>
    %14 = arith.subf %12, %13 : vector<8x128xf32>
    %15 = math.log1p %10 : vector<8x128xf32>
    %16 = arith.addf %14, %15 : vector<8x128xf32>
    %cst_7 = arith.constant 1.000000e+00 : f32
    %17 = vector.broadcast %cst_7 : f32 to vector<8x128xf32>
    %18 = arith.addf %17, %10 : vector<8x128xf32>
    %19 = tpu.reciprocal %18 {approx = true} : vector<8x128xf32> -> vector<8x128xf32>
    %cst_8 = arith.constant 0.000000e+00 : f32
    %20 = vector.broadcast %cst_8 : f32 to vector<8x128xf32>
    %21 = arith.cmpf oge, %4, %20 : vector<8x128xf32>
    %22 = arith.mulf %10, %19 : vector<8x128xf32>
    %23 = arith.select %21, %19, %22 : vector<8x128xi1>, vector<8x128xf32>
    %24 = arith.mulf %23, %6 : vector<8x128xf32>
    %cst_9 = arith.constant 1.000000e+00 : f32
    %25 = vector.broadcast %cst_9 : f32 to vector<8x128xf32>
    %26 = arith.subf %25, %23 : vector<8x128xf32>
    %cst_10 = arith.constant 1.000000e+00 : f32
    %27 = vector.broadcast %cst_10 : f32 to vector<8x128xf32>
    %28 = arith.subf %27, %6 : vector<8x128xf32>
    %29 = arith.mulf %26, %28 : vector<8x128xf32>
    %30 = arith.addf %24, %29 : vector<8x128xf32>
    %cst_11 = arith.constant 1.000000e+00 : f32
    %31 = vector.broadcast %cst_11 : f32 to vector<8x128xf32>
    %32 = arith.subf %31, %30 : vector<8x128xf32>
    %33 = arith.mulf %32, %32 : vector<8x128xf32>
    %34 = arith.mulf %33, %16 : vector<8x128xf32>
    %35 = arith.addf %16, %34 : vector<8x128xf32>
    %36 = arith.mulf %23, %6 : vector<8x128xf32>
    %37 = arith.addf %23, %6 : vector<8x128xf32>
    %c0_12 = arith.constant 0 : index
    %c0_13 = arith.constant 0 : index
    %c0_14 = arith.constant 0 : index
    %38 = vector.load %arg4[%c0_12, %c0_13, %c0_14] : memref<1x8x128xf32, #tpu.memory_space<vmem>>, vector<1x8x128xf32>
    %39 = vector.shape_cast %38 : vector<1x8x128xf32> to vector<8x128xf32>
    %40 = vector.shape_cast %35 : vector<8x128xf32> to vector<1x8x128xf32>
    %cst_15 = arith.constant dense<0.000000e+00> : vector<8x128xf32>
    %41 = vector.multi_reduction <add>, %40, %cst_15 [0] : vector<1x8x128xf32> to vector<8x128xf32>
    %42 = arith.addf %39, %41 : vector<8x128xf32>
    %c0_16 = arith.constant 0 : index
    %c0_17 = arith.constant 0 : index
    %c0_18 = arith.constant 0 : index
    %43 = vector.load %arg4[%c0_16, %c0_17, %c0_18] : memref<1x8x128xf32, #tpu.memory_space<vmem>>, vector<1x8x128xf32>
    %44 = vector.shape_cast %43 : vector<1x8x128xf32> to vector<8x128xf32>
    %45 = vector.shape_cast %42 : vector<8x128xf32> to vector<1x8x128xf32>
    tpu.vector_store %arg4[%c0_16, %c0_17, %c0_18], %45 {strides = array<i32>} : memref<1x8x128xf32, #tpu.memory_space<vmem>>, vector<1x8x128xf32>,
    %c0_19 = arith.constant 0 : index
    %c0_20 = arith.constant 0 : index
    %c0_21 = arith.constant 0 : index
    %46 = vector.load %arg5[%c0_19, %c0_20, %c0_21] : memref<1x8x128xf32, #tpu.memory_space<vmem>>, vector<1x8x128xf32>
    %47 = vector.shape_cast %46 : vector<1x8x128xf32> to vector<8x128xf32>
    %48 = vector.shape_cast %36 : vector<8x128xf32> to vector<1x8x128xf32>
    %cst_22 = arith.constant dense<0.000000e+00> : vector<8x128xf32>
    %49 = vector.multi_reduction <add>, %48, %cst_22 [0] : vector<1x8x128xf32> to vector<8x128xf32>
    %50 = arith.addf %47, %49 : vector<8x128xf32>
    %c0_23 = arith.constant 0 : index
    %c0_24 = arith.constant 0 : index
    %c0_25 = arith.constant 0 : index
    %51 = vector.load %arg5[%c0_23, %c0_24, %c0_25] : memref<1x8x128xf32, #tpu.memory_space<vmem>>, vector<1x8x128xf32>
    %52 = vector.shape_cast %51 : vector<1x8x128xf32> to vector<8x128xf32>
    %53 = vector.shape_cast %50 : vector<8x128xf32> to vector<1x8x128xf32>
    tpu.vector_store %arg5[%c0_23, %c0_24, %c0_25], %53 {strides = array<i32>} : memref<1x8x128xf32, #tpu.memory_space<vmem>>, vector<1x8x128xf32>,
    %c0_26 = arith.constant 0 : index
    %c0_27 = arith.constant 0 : index
    %c0_28 = arith.constant 0 : index
    %54 = vector.load %arg6[%c0_26, %c0_27, %c0_28] : memref<1x8x128xf32, #tpu.memory_space<vmem>>, vector<1x8x128xf32>
    %55 = vector.shape_cast %54 : vector<1x8x128xf32> to vector<8x128xf32>
    %56 = vector.shape_cast %37 : vector<8x128xf32> to vector<1x8x128xf32>
    %cst_29 = arith.constant dense<0.000000e+00> : vector<8x128xf32>
    %57 = vector.multi_reduction <add>, %56, %cst_29 [0] : vector<1x8x128xf32> to vector<8x128xf32>
    %58 = arith.addf %55, %57 : vector<8x128xf32>
    %c0_30 = arith.constant 0 : index
    %c0_31 = arith.constant 0 : index
    %c0_32 = arith.constant 0 : index
    %59 = vector.load %arg6[%c0_30, %c0_31, %c0_32] : memref<1x8x128xf32, #tpu.memory_space<vmem>>, vector<1x8x128xf32>
    %60 = vector.shape_cast %59 : vector<1x8x128xf32> to vector<8x128xf32>
    %61 = vector.shape_cast %58 : vector<8x128xf32> to vector<1x8x128xf32>
    tpu.vector_store %arg6[%c0_30, %c0_31, %c0_32], %61 {strides = array<i32>} : memref<1x8x128xf32, #tpu.memory_space<vmem>>, vector<1x8x128xf32>,
    return
  }
  func.func @transform_0(%arg0: i32, %arg1: i32) -> (i32, i32, i32) {
    %c0_i32 = arith.constant 0 : i32
    %c0_i32_0 = arith.constant 0 : i32
    return %arg0, %arg1, %c0_i32 : i32, i32, i32
  }
  func.func @transform_1(%arg0: i32, %arg1: i32) -> (i32, i32, i32) {
    %c0_i32 = arith.constant 0 : i32
    %c0_i32_0 = arith.constant 0 : i32
    return %arg0, %arg1, %c0_i32 : i32, i32, i32
  }
  func.func @transform_2(%arg0: i32, %arg1: i32) -> (i32, i32, i32) {
    %c0_i32 = arith.constant 0 : i32
    %c0_i32_0 = arith.constant 0 : i32
    %c0_i32_1 = arith.constant 0 : i32
    return %arg0, %c0_i32, %c0_i32_0 : i32, i32, i32
  }
  func.func @transform_3(%arg0: i32, %arg1: i32) -> (i32, i32, i32) {
    %c0_i32 = arith.constant 0 : i32
    %c0_i32_0 = arith.constant 0 : i32
    %c0_i32_1 = arith.constant 0 : i32
    return %arg0, %c0_i32, %c0_i32_0 : i32, i32, i32
  }
  func.func @transform_4(%arg0: i32, %arg1: i32) -> (i32, i32, i32) {
    %c0_i32 = arith.constant 0 : i32
    %c0_i32_0 = arith.constant 0 : i32
    %c0_i32_1 = arith.constant 0 : i32
    return %arg0, %c0_i32, %c0_i32_0 : i32, i32, i32
  }
}

</mosaic_0001>

<bundles_post_ra>
// kernel: tpu_custom_call.1
= control target key start
LH: loop header
LB: loop body
LE: loop exit
PB: predicated region body
PF: predicated region fallthrough
CT: control target
= control target key end

     0   :  { %10 = vsyncpa [#allocation3], 0  ;;  %s1204_s0 = inlined_call_operand.hbm [shape: f32[2,8,128], index: 0, kind: input, shape index: {}]   ;;  %s1205_s1 = inlined_call_operand.hbm [shape: f32[2,8,128], index: 1, kind: input, shape index: {}]   ;;  %s1206_s2 = inlined_call_operand.hbm [shape: f32[2,8,128], index: 2, kind: output, shape index: {0}]   ;;  %s1207_s3 = inlined_call_operand.hbm [shape: f32[2,8,128], index: 3, kind: output, shape index: {1}]   ;;  %s1208_s4 = inlined_call_operand.hbm [shape: f32[2,8,128], index: 4, kind: output, shape index: {2}]  }
   0x1   :  { %12 = vsyncpa [#allocation3 + $0x1], 0 }
   0x2   :  { %13 = vsyncpa [#allocation6], 0 }
   0x3   :  { %15 = vsyncpa [#allocation6 + $0x1], 0 }
   0x4   :  { %16 = vsyncpa [#allocation4], 0 }
   0x5   :  { %18 = vsyncpa [#allocation4 + $0x1], 0 }
   0x6   :  { %19 = vsyncpa [#allocation9], 0 }
   0x7   :  { %21 = vsyncpa [#allocation9 + $0x1], 0  ;;  %s897_s15 = smov 0   ;;  %s899_s16 = smov 0  }
   0x8   :  { %s901_s17 = smov 0   ;;  %s903_s18 = smov 0  }
   0x9   :  { %s905_s19 = smov 0   ;;  %s907_s20 = smov 0  }
   0xa LB: > { %s928_s21 = sadd.s32 4294967295, %s865_s20   ;;  %s1209_s22 = sadd.s32 4294967294, %s865_s20   ;;  %s865_s20 = sphi %s907_s20, %s27_s20   ;;  %s861_s19 = sphi %s905_s19, %s1232_s19   ;;  %s857_s18 = sphi %s903_s18, %s1231_s18   ;;  %s853_s17 = sphi %s901_s17, %s1230_s17   ;;  %s849_s16 = sphi %s899_s16, %s1229_s16   ;;  %s845_s15 = sphi %s897_s15, %s1228_s15  }
   0xb   : > { %s39_s23 = sadd.s32 1, %s861_s19  ;;  %s48_s24 = sadd.s32 1, %s853_s17 }
   0xc   : > { %p41_p0 = scmp.ge.s32.totalorder %s39_s23, 2  ;;  %p55_p1 = scmp.ne.s32.totalorder %s853_s17, %s849_s16 }
   0xd   : > { %p56_p2 = scmp.eq.s32.totalorder %s865_s20, 0  ;;  %p61_p3 = scmp.ne.s32.totalorder %s849_s16, %s845_s15 }
   0xe   : > { %s1234_s23 = smov (%p41_p0, %s39_s23), 0  ;;  %p62_p5 = scmp.eq.s32.totalorder %s928_s21, 0 }
   0xf   : > { %p940_p4 = por %p56_p2, %p55_p1  ;;  %s43_s26 = ssub.s32 %s861_s19, %s1234_s23 }
  0x10   : > { %p113_p6 = scmp.eq.s32.totalorder %s928_s21, 1  ;;  %p46_p7 = scmp.eq.s32.totalorder %s43_s26, 0 }
  0x11   : > { %p948_p8 = por %p62_p5, %p61_p3  ;;  %p119_p10 = scmp.eq.s32.totalorder %s1209_s22, 1 }
  0x12   : > { %p952_p9 = por %p113_p6, %p55_p1  ;;  %p602_p13 = scmp.lt.s32.totalorder %s865_s20, 2 }
  0x13   : > { %s1213_s27 = scalar_select %p948_p8, 1, 0 }
  0x14   : > { %s1214_s28 = scalar_select %p952_p9, 1, 0 }
  0x15   : > { %s959_s29 = scalar_select %p46_p7, %s853_s17, %s48_s24  }
  0x16   : > { %p961_p11 = por %p119_p10, %p61_p3  ;;  %s968_s5 = sand.u32 1, %s853_s17  }
  0x17   : > { %s557_s6 = sshll.u32 %s968_s5, 3  ;;  %s558_s7 = sshll.u32 %s861_s19, 7 }
  0x18   : > { %s1215_s30 = scalar_select %p961_p11, 1, 0 }
  0x19   : > { %s977_s10 = scalar_lea.hbm %s1204_s0, %s558_s7  ;;  %s195_s11 = scalar_lea.vmem [#allocation2], %s557_s6 }
  0x1a   : > { %s203_s12 = sshll.u32 %s195_s11, 4  ;;  %p985_p0 = pnand %p602_p13, %p940_p4  ;;  %s981_s12 = int_to_ptr.vmem [resolvable:$true] %s203_s12 }
  0x1b   : > { %s192_s14 = scalar_lea.sflag [#allocation3], %s968_s5  ;;  %s659_s24 = scalar_lea.hbm %s977_s10, 128 }
  0x1c   : > { %p660_p3 = scmp.ne.s32.totalorder %s977_s10, %s659_s24  ;;  %p661_p5 = pneg %p985_p0 }
  0x1d   : > { %s664_s25 = scalar_lea.hbm %s1204_s0, 256  ;;  %p665_p4 = scmp.lt.u32.totalorder %s977_s10, %s1204_s0 }
  0x1e   : > { %p662_p6 = pnand %p661_p5, %p660_p3  ;;  %p666_p10 = scmp.lt.u32.totalorder %s664_s25, %s659_s24 }
  0x1f   : > { %p668_p12 = scmp.lt.u32.totalorder %s659_s24, %s977_s10 }
  0x20   : > { %p663_p7 = pneg %p662_p6  ;;  %p667_p13 = por %p666_p10, %p665_p4 }
  0x22   : > { %p669_p1 = por %p668_p12, %p667_p13 }
  0x24   : > { %p670_p2 = pnand %p669_p1, %p663_p7 }
  0x26   : > { %673 = shalt.err (!%p670_p2)
}
  0x27   : > { %s674_s22 = scalar_lea.vmem %s981_s12, 128  ;;  %s867_s26 = smov [#allocation2]  }
  0x28   : > { %p675_p3 = scmp.ne.s32.totalorder %s981_s12, %s674_s22  ;;  %s679_s8 = sshll.u32 %s867_s26, 4  ;;  %s680_s8 = int_to_ptr.vmem [resolvable:$false] %s679_s8 }
  0x29   : > { %s681_s9 = scalar_lea.vmem %s680_s8, 256  ;;  %p682_p9 = scmp.lt.s32.totalorder %s981_s12, %s680_s8 }
  0x2a   : > { %p677_p6 = pnand %p675_p3, %p661_p5  ;;  %p683_p4 = scmp.lt.s32.totalorder %s681_s9, %s674_s22 }
  0x2c   : > { %p678_p11 = pneg %p677_p6  ;;  %p684_p10 = por %p683_p4, %p682_p9 }
  0x2e   : > { %p685_p12 = pnand %p684_p10, %p678_p11 }
  0x30   : > { %688 = shalt.err (!%p685_p12)
}
  0x31   : > { %588 = dma.hbm_to_vmem [thread:$0]  (!%p985_p0), %s977_s10, 128, %s981_s12, %s192_s14  }
  0x32   : > { %p1217_p1 = scmp.lt.s32.totalorder %s865_s20, 3  ;;  %p1218_p2 = scmp.ge.s32.totalorder %s865_s20, 1 }
  0x33   : > { %s1030_s11 = scalar_lea.hbm %s1205_s1, %s558_s7  ;;  %s214_s26 = scalar_lea.vmem [#allocation5], %s557_s6 }
  0x34   : > { %p1021_p7 = pnand %p1218_p2, %p1217_p1  ;;  %s222_s8 = sshll.u32 %s214_s26, 4  ;;  %s223_s8 = int_to_ptr.vmem [resolvable:$true] %s222_s8 }
  0x35   : > { %s211_s10 = scalar_lea.sflag [#allocation6], %s968_s5  ;;  %s689_s12 = scalar_lea.hbm %s1030_s11, 128 }
  0x36   : > { %s1219_s24 = scalar_select %p1021_p7, 1, 0 }
  0x37   : > { %p690_p9 = scmp.ne.s32.totalorder %s1030_s11, %s689_s12  ;;  %s694_s7 = scalar_lea.hbm %s1205_s1, 256 }
  0x38   : > { %p695_p3 = scmp.lt.u32.totalorder %s1030_s11, %s1205_s1  ;;  %p696_p6 = scmp.lt.u32.totalorder %s694_s7, %s689_s12 }
  0x39   : > { %p692_p11 = pnand %p690_p9, %p661_p5  ;;  %p698_p10 = scmp.lt.u32.totalorder %s689_s12, %s1030_s11 }
  0x3a   : > { %p697_p4 = por %p696_p6, %p695_p3 }
  0x3b   : > { %p693_p13 = pneg %p692_p11 }
  0x3c   : > { %p699_p12 = por %p698_p10, %p697_p4 }
  0x3e   : > { %p700_p1 = pnand %p699_p12, %p693_p13 }
  0x40   : > { %703 = shalt.err (!%p700_p1)
}
  0x41   : > { %s704_s5 = scalar_lea.vmem %s223_s8, 128  ;;  %s868_s6 = smov [#allocation5]  }
  0x42   : > { %p705_p2 = scmp.ne.s32.totalorder %s223_s8, %s704_s5  ;;  %s709_s26 = sshll.u32 %s868_s6, 4  ;;  %s710_s26 = int_to_ptr.vmem [resolvable:$false] %s709_s26 }
  0x43   : > { %s711_s14 = scalar_lea.vmem %s710_s26, 256  ;;  %p712_p8 = scmp.lt.s32.totalorder %s223_s8, %s710_s26 }
  0x44   : > { %p707_p9 = pnand %p705_p2, %p661_p5  ;;  %p713_p7 = scmp.lt.s32.totalorder %s711_s14, %s704_s5 }
  0x46   : > { %p708_p11 = pneg %p707_p9  ;;  %p714_p3 = por %p713_p7, %p712_p8 }
  0x48   : > { %p715_p6 = pnand %p714_p3, %p708_p11 }
  0x4a   : > { %718 = shalt.err (!%p715_p6)
}
  0x4b   : > { %591 = dma.hbm_to_vmem [thread:$0]  (!%p985_p0), %s1030_s11, 128, %s223_s8, %s211_s10  }
  0x4c   : > { %p1220_p13 = scmp.ne.s32.totalorder %s1219_s24, 0 }
  0x4d   : > { %s1057_s12 = sand.u32 (!%p1220_p13), 1, %s849_s16   ;;  %p1221_p8 = scmp.ne.s32.totalorder (!%p1220_p13), %s1213_s27, 0 }
  0x4e   : > { %231 = sbr.rel (%p1220_p13) target bundleno = 186 (0xba), region = 28  ;;  %s1060_s9 = sshll.u32 (!%p1220_p13), %s1057_s12, 3 }
  0x4f   : > { %s234_s7 = scalar_lea.sflag (!%p1220_p13), [#allocation3], %s1057_s12  ;;  %s237_s22 = scalar_lea.vmem (!%p1220_p13), [#allocation2], %s1060_s9 }
  0x55   : > { %828 = dma.done.wait (%p1221_p8), %s234_s7, 128  }
  0x56   : > { %830 = vsyncadd (%p1221_p8), %s234_s7, 4294967168  ;;  %s243_s13 = scalar_lea.sflag [#allocation6], %s1057_s12  ;;  %s246_s24 = scalar_lea.vmem [#allocation5], %s1060_s9 }
  0x57   : > { %832 = dma.done.wait (%p1221_p8), %s243_s13, 128  }
  0x58   : > { %834 = vsyncadd (%p1221_p8), %s243_s13, 4294967168  ;;  %v293_v0 = vld [vmem:[%s237_s22] sm:$0xff]  ;;  %v294_v7 = vld [vmem:[%s246_s24] sm:$0xff]  ;;  %s344_s27 = sand.u32 1, %s928_s21   ;;  %s1076_s11 = sshll.u32 %s857_s18, 7 }
  0x59   : > { %v295_v1 = vand.u32 2147483647, %v293_v0  ;;  %vm314_vm0 = vcmp.ge.f32.partialorder %v293_v0, 0.0  ;;  %v319_v13 = vsub.f32 1.0, %v294_v7  ;;  %v299_v14 = vmax.f32 %v293_v0, 0.0  ;;  %s278_s8 = scalar_lea.vmem [#allocation8], %s1060_s9  ;;  %s1088_s18 = scalar_lea.hbm %s1207_s3, %s1076_s11 }
  0x5a   : > { %v300_v15 = vmul.f32 %v294_v7, %v293_v0  ;;  %s376_s10 = sshll.u32 %s278_s8, 4  ;;  %s285_s25 = scalar_lea.vmem [#allocation10], %s1060_s9  ;;  %s1090_s10 = int_to_ptr.vmem [resolvable:$true] %s376_s10 }
  0x5b   : > { %v296_v2 = vsub.f32 0.0, %v295_v1  ;;  %s389_s5 = sshll.u32 %s285_s25, 4  ;;  %s1100_s7 = scalar_lea.hbm %s1208_s4, %s1076_s11  ;;  %s1092_s5 = int_to_ptr.vmem [resolvable:$true] %s389_s5 }
  0x5c   : > { %v301_v24 = vsub.f32 %v299_v14, %v300_v15  ;;  %s1102_s22 = scalar_lea.sflag [#allocation9], %s344_s27  ;;  %s719_s13 = scalar_lea.vmem %s1090_s10, 128 }
  0x5d   : > { %v297_v3 = vmul.f32 1.442695, %v296_v2  ;;  %p720_p0 = scmp.ne.s32.totalorder %s1090_s10, %s719_s13  ;;  %p1224_p5 = scmp.ne.s32.totalorder %s1214_s28, 0 }
  0x5e   : > { %s869_s24 = smov [#allocation8]  }
  0x5f   : > { %653 = vpow2.f32 %v297_v3  ;;  %p721_p7 = pnand %p720_p0, %p1224_p5  ;;  %s723_s21 = sshll.u32 %s869_s24, 4  ;;  %s724_s21 = int_to_ptr.vmem [resolvable:$false] %s723_s21 }
  0x60   : > { %s725_s6 = scalar_lea.vmem %s724_s21, 256  ;;  %p726_p10 = scmp.lt.s32.totalorder %s1090_s10, %s724_s21 }
  0x61   : > { %p722_p4 = pneg %p721_p7  ;;  %p727_p12 = scmp.lt.s32.totalorder %s725_s6, %s719_s13 }
  0x63   : > { %p728_p1 = por %p727_p12, %p726_p10 }
  0x65   : > { %p729_p2 = pnand %p728_p1, %p722_p4 }
  0x69   : > { %v654_v4 = vpop.eup %653 }
  0x6a   : > { %v302_v5 = vadd.f32 1.0, %v654_v4  ;;  %v305_v6 = vmul.f32 -0.5, %v654_v4  ;;  %v308_v10 = vand.u32 2147483647, %v654_v4 }
  0x6c   : > { %655 = vrcp.f32 %v302_v5  ;;  %v306_v8 = vadd.f32 1.0, %v305_v6  ;;  %vm1080_vm1 = vcmp.lt.f32.partialorder %v308_v10, 0.0004427343 }
  0x6d   : > { %657 = vlog2.f32 %v302_v5 }
  0x6e   : > { %v307_v18 = vmul.f32 %v654_v4, %v306_v8 }
  0x76   : > { %v656_v9 = vpop.eup %655 }
  0x77   : > { %v658_v11 = vpop.eup %657  ;;  %v315_v12 = vmul.f32 %v656_v9, %v654_v4 }
  0x78   : > { %v304_v17 = vmul.f32 0.6931472, %v658_v11 }
  0x79   : > { %v316_v16 = vsel %vm314_vm0, %v656_v9, %v315_v12 }
  0x7a   : > { %v317_v19 = vmul.f32 %v316_v16, %v294_v7  ;;  %v318_v20 = vsub.f32 1.0, %v316_v16  ;;  %v326_v22 = vadd.f32 %v316_v16, %v294_v7  ;;  %v310_v25 = vsel %vm1080_vm1, %v307_v18, %v304_v17 }
  0x7c   : > { %v320_v23 = vmul.f32 %v319_v13, %v318_v20  ;;  %334 = vst [vmem:[%s278_s8] sm:$0xff] %v317_v19  ;;  %338 = vst [vmem:[%s285_s25] sm:$0xff] %v326_v22 }
  0x7e   : > { %v321_v26 = vadd.f32 %v320_v23, %v317_v19 }
  0x7f   : > { %732 = shalt.err (!%p729_p2)
}
  0x80   : > { %s733_s27 = scalar_lea.hbm %s1088_s18, 128  ;;  %s737_s26 = scalar_lea.hbm %s1207_s3, 256 }
  0x81   : > { %p734_p9 = scmp.ne.s32.totalorder %s1088_s18, %s733_s27  ;;  %p738_p6 = scmp.lt.u32.totalorder %s1088_s18, %s1207_s3 }
  0x82   : > { %p739_p13 = scmp.lt.u32.totalorder %s737_s26, %s733_s27  ;;  %p741_p0 = scmp.lt.u32.totalorder %s733_s27, %s1088_s18 }
  0x83   : > { %p735_p11 = pnand %p734_p9, %p1224_p5 }
  0x84   : > { %p740_p8 = por %p739_p13, %p738_p6 }
  0x85   : > { %p736_p3 = pneg %p735_p11 }
  0x86   : > { %p742_p7 = por %p741_p0, %p740_p8 }
  0x88   : > { %p743_p4 = pnand %p742_p7, %p736_p3 }
  0x8a   : > { %746 = shalt.err (!%p743_p4)
}
  0x8b   : > { %580 = dma.vmem_to_hbm [thread:$0]  (%p1224_p5), %s1090_s10, 128, %s1088_s18, %s1102_s22   ;;  %v322_v27 = vsub.f32 1.0, %v321_v26  ;;  %v311_v28 = vadd.f32 %v310_v25, %v301_v24 }
  0x8c   : > { %s747_s13 = scalar_lea.vmem %s1092_s5, 128  ;;  %s870_s21 = smov [#allocation10]  }
  0x8d   : > { %p748_p10 = scmp.ne.s32.totalorder %s1092_s5, %s747_s13  ;;  %s751_s6 = sshll.u32 %s870_s21, 4  ;;  %s752_s6 = int_to_ptr.vmem [resolvable:$false] %s751_s6 }
  0x8e   : > { %s753_s27 = scalar_lea.vmem %s752_s6, 256  ;;  %p754_p2 = scmp.lt.s32.totalorder %s1092_s5, %s752_s6 }
  0x8f   : > { %p749_p12 = pnand %p748_p10, %p1224_p5  ;;  %p755_p9 = scmp.lt.s32.totalorder %s753_s27, %s747_s13 }
  0x91   : > { %p750_p1 = pneg %p749_p12  ;;  %p756_p11 = por %p755_p9, %p754_p2 }
  0x93   : > { %p757_p3 = pnand %p756_p11, %p750_p1 }
  0x95   : > { %760 = shalt.err (!%p757_p3)
}
  0x96   : > { %s761_s10 = scalar_lea.hbm %s1100_s7, 128  ;;  %s765_s25 = scalar_lea.hbm %s1208_s4, 256 }
  0x97   : > { %p762_p6 = scmp.ne.s32.totalorder %s1100_s7, %s761_s10  ;;  %p766_p0 = scmp.lt.u32.totalorder %s1100_s7, %s1208_s4 }
  0x98   : > { %p767_p7 = scmp.lt.u32.totalorder %s765_s25, %s761_s10  ;;  %p769_p10 = scmp.lt.u32.totalorder %s761_s10, %s1100_s7 }
  0x99   : > { %p763_p13 = pnand %p762_p6, %p1224_p5 }
  0x9a   : > { %p768_p4 = por %p767_p7, %p766_p0 }
  0x9b   : > { %p764_p8 = pneg %p763_p13 }
  0x9c   : > { %p770_p12 = por %p769_p10, %p768_p4 }
  0x9e   : > { %p771_p1 = pnand %p770_p12, %p764_p8 }
  0xa0   : > { %774 = shalt.err (!%p771_p1)
}
  0xa1   : > { %581 = dma.vmem_to_hbm [thread:$0]  (%p1224_p5), %s1092_s5, 128, %s1100_s7, %s1102_s22   ;;  %v323_v29 = vmul.f32 %v322_v27, %v322_v27 }
  0xa2   : > { %s271_s24 = scalar_lea.vmem [#allocation7], %s1060_s9  ;;  %s1153_s27 = scalar_lea.hbm %s1206_s2, %s1076_s11 }
  0xa3   : > { %v324_v30 = vmul.f32 %v323_v29, %v311_v28  ;;  %s363_s13 = sshll.u32 %s271_s24, 4  ;;  %s340_s10 = scalar_lea.sflag [#allocation4], %s1057_s12  ;;  %s1155_s13 = int_to_ptr.vmem [resolvable:$true] %s363_s13 }
  0xa4   : > { %s775_s18 = scalar_lea.vmem %s1155_s13, 128  ;;  %s871_s9 = smov [#allocation7]  }
  0xa5   : > { %v325_v31 = vadd.f32 %v324_v30, %v311_v28  ;;  %p776_p2 = scmp.ne.s32.totalorder %s1155_s13, %s775_s18  ;;  %s779_s5 = sshll.u32 %s871_s9, 4  ;;  %s780_s5 = int_to_ptr.vmem [resolvable:$false] %s779_s5 }
  0xa6   : > { %s781_s7 = scalar_lea.vmem %s780_s5, 256  ;;  %p782_p3 = scmp.lt.s32.totalorder %s1155_s13, %s780_s5 }
  0xa7   : > { %330 = vst [vmem:[%s271_s24] sm:$0xff] %v325_v31  ;;  %p777_p9 = pnand %p776_p2, %p1224_p5  ;;  %p783_p6 = scmp.lt.s32.totalorder %s781_s7, %s775_s18 }
  0xa9   : > { %p778_p11 = pneg %p777_p9  ;;  %p784_p13 = por %p783_p6, %p782_p3 }
  0xab   : > { %p785_p8 = pnand %p784_p13, %p778_p11 }
  0xad   : > { %788 = shalt.err (!%p785_p8)
}
  0xae   : > { %s789_s12 = scalar_lea.hbm %s1153_s27, 128  ;;  %s793_s8 = scalar_lea.hbm %s1206_s2, 256 }
  0xaf   : > { %p790_p0 = scmp.ne.s32.totalorder %s1153_s27, %s789_s12  ;;  %p794_p10 = scmp.lt.u32.totalorder %s1153_s27, %s1206_s2 }
  0xb0   : > { %p795_p12 = scmp.lt.u32.totalorder %s793_s8, %s789_s12  ;;  %p797_p2 = scmp.lt.u32.totalorder %s789_s12, %s1153_s27 }
  0xb1   : > { %p791_p7 = pnand %p790_p0, %p1224_p5 }
  0xb2   : > { %p796_p1 = por %p795_p12, %p794_p10 }
  0xb3   : > { %p792_p4 = pneg %p791_p7 }
  0xb4   : > { %p798_p9 = por %p797_p2, %p796_p1 }
  0xb6   : > { %p799_p11 = pnand %p798_p9, %p792_p4 }
  0xb8   : > { %802 = shalt.err (!%p799_p11)
}
  0xb9   : > { %579 = dma.vmem_to_hbm [thread:$0]  (%p1224_p5), %s1155_s13, 128, %s1153_s27, %s340_s10  }
  0xba PF: > { %s401_s14 = sand.u32 1, %s845_s15   ;;  %p1225_p3 = scmp.ne.s32.totalorder %s1215_s30, 0 }
  0xbb   : > { %p1226_p6 = scmp.ge.s32.totalorder %s865_s20, 2  ;;  %s402_s24 = scalar_lea.sflag [#allocation4], %s401_s14 }
  0xbd   : > { %p593_p13 = pnand %p1226_p6, %p1225_p3 }
  0xbf   : > { %836 = dma.done.wait (!%p593_p13), %s402_s24, 128  }
  0xc0   : > { %838 = vsyncadd (!%p593_p13), %s402_s24, 4294967168  ;;  %s1227_s21 = sadd.s32 4294967294, %s865_s20  }
  0xc1   : > { %s410_s6 = sand.u32 1, %s1227_s21  }
  0xc2   : > { %s411_s18 = scalar_lea.sflag [#allocation9], %s410_s6 }
  0xc3   : > { %840 = dma.done.wait (!%p593_p13), %s411_s18, 256  }
  0xc4   : > { %842 = vsyncadd (!%p593_p13), %s411_s18, 4294967040  ;;  %s27_s20 = sadd.s32 1, %s865_s20   ;;  %s1228_s15 = smov %s849_s16 }
  0xc5   : > { %p24_p5 = scmp.ge.s32.totalorder %s27_s20, 4   ;;  %s1229_s16 = smov %s853_s17 }
  0xc6   : > { %s1230_s17 = smov %s959_s29  ;;  %s1231_s18 = smov %s861_s19 }
  0xc7   : > { %s1232_s19 = smov %s1234_s23  ;;  %26 = sbr.rel (!%p24_p5) target bundleno = 10 (0xa), region = 122 }
  0xce   :  { %425 = vsyncpa [#allocation3], 1 }
  0xcf   :  { %427 = vsyncpa [#allocation3 + $0x1], 1 }
  0xd0   :  { %428 = vsyncpa [#allocation6], 1 }
  0xd1   :  { %430 = vsyncpa [#allocation6 + $0x1], 1 }
  0xd2   :  { %431 = vsyncpa [#allocation4], 1 }
  0xd3   :  { %433 = vsyncpa [#allocation4 + $0x1], 1 }
  0xd4   :  { %434 = vsyncpa [#allocation9], 1 }
  0xd5   :  { %436 = vsyncpa [#allocation9 + $0x1], 1 }

</bundles_post_ra>
